<compile_context>
chip_gen: v6e
topology: v6e:2x2x1
jax: 0.10.0
libtpu: 0.0.40
codegen_flags: <defaults>
</compile_context>

<pallas_src>
import jax
import jax.numpy as jnp
from jax.experimental import pallas as pl
from jax.experimental.pallas import tpu as pltpu

_LANE = 128


def _round_up(v, m):
    return ((v + m - 1) // m) * m


def _padded_row_bytes(cols, dtype):
    """Bytes of one tile row in VMEM after lane padding (last dim -> 128)."""
    return _round_up(max(int(cols), 1), _LANE) * jnp.dtype(dtype).itemsize


def _padded_tile_bytes(rows, cols, dtype):
    item = jnp.dtype(dtype).itemsize
    sub = {4: 8, 2: 16, 1: 32}.get(item, 8)   # sublane packing per dtype width
    return (_round_up(max(int(rows), 1), sub)
            * _round_up(max(int(cols), 1), _LANE) * item)


def _vmem_capacity_bytes():
    try:
        cap = getattr(pltpu.get_tpu_info(), "vmem_capacity_bytes", None)
        if cap:
            return int(cap)
    except Exception:
        pass
    return 64 << 20   # conservative fallback == v7x per-TensorCore VMEM


def _dot_f32(a, b):
    # HIGHEST precision: one-hot / f32 matmuls stay (near-)exact on the MXU.
    return jnp.dot(a, b, preferred_element_type=jnp.float32,
                   precision=jax.lax.Precision.HIGHEST)


def coupling_amor_kernel(x_ref, offrep_ref, seg_ref, pont_ref,
                         w_ref, b_ref, u_ref, o_ref):
    x = x_ref[...].astype(jnp.float32)                       # [TB, W]

    # Fused permutation + even/odd de-interleave + lane replication (MXU):
    # off_rep[:, i*H + j] == off[:, j]   -> lane-dense [TB, H*H]
    off_rep = _dot_f32(x, offrep_ref[...])

    # Lane-dense batched mat-vec: elementwise multiply (VPU) + 0/1 segment-sum
    # matmul (MXU) instead of a lane-padded (TB,H,H) multiply + XLU reduce.
    m = w_ref[...].astype(jnp.float32) * off_rep              # [TB, H*H]
    prod = _dot_f32(m, seg_ref[...]) + b_ref[...].astype(jnp.float32)   # [TB, H]

    shift = u_ref[...].astype(jnp.float32) * jnp.tanh(prod)   # [TB, H]

    # out = x + shift @ P_on^T   (P P^T == I folds the two permutation matmuls)
    out = x + _dot_f32(shift, pont_ref[...])                  # [TB, W]
    o_ref[...] = out.astype(o_ref.dtype)


def coupling_amor_forward(x, u, w, b, P, *, param_dtype=jnp.bfloat16,
                          tb_max=2048):
    """Pallas implementation of Coupling_amor.forward(x, u, w, b)."""
    B, W = x.shape
    H = W // 2
    HH = H * H

    P = P.astype(jnp.float32)
    p_off = P[:, 1::2]                                   # [W, H]
    p_on_t = P[:, 0::2].T                                # [H, W]
    off_rep_mat = jnp.tile(p_off, (1, H))                # [W, H*H]
    seg = jnp.repeat(jnp.eye(H, dtype=jnp.float32), H, axis=0)   # [H*H, H]

    # Lane-dense flattened w (free row-major reshape) + squeezed u/b.
    w_flat = w.reshape(B, HH)
    u2 = u.reshape(B, H)
    b2 = b.reshape(B, H)
    if param_dtype is not None and jnp.dtype(param_dtype) != jnp.dtype(w_flat.dtype):
        # Halves HBM bytes of the dominant streamed tensor (bf16).  Use
        # param_dtype=None if w is produced in f32 and consumed only once.
        w_flat = w_flat.astype(param_dtype)
        u2 = u2.astype(param_dtype)
        b2 = b2.astype(param_dtype)

    # ---- Padding-aware, generation-aware VMEM / tile budgeting ----
    vmem_cap = _vmem_capacity_bytes()
    budget = int(0.45 * vmem_cap)

    pinned = 2 * (_padded_tile_bytes(W, HH, jnp.float32)
                  + _padded_tile_bytes(HH, H, jnp.float32)
                  + _padded_tile_bytes(H, W, jnp.float32))

    per_row = 2 * (_padded_row_bytes(W, x.dtype)            # x   (double-buffered)
                   + _padded_row_bytes(W, x.dtype)          # out
                   + _padded_row_bytes(HH, w_flat.dtype)    # w   (dominant)
                   + _padded_row_bytes(H, b2.dtype)         # b
                   + _padded_row_bytes(H, u2.dtype))        # u

    tb = max(8, min(int(tb_max), max(per_row, budget - pinned) // per_row))
    if B >= 64:
        # Keep >= 4 tiles so both v7x TensorCores get work + pipeline overlap.
        tb = min(tb, max(8, (B // 4) // 8 * 8))
    tb = max(8, (tb // 8) * 8)
    if tb >= B:
        tb = B                      # single full-batch tile (block dim == dim)
    grid = (pl.cdiv(B, tb),)

    need = tb * per_row + pinned + (2 << 20)
    vmem_limit = int(min(int(0.9 * vmem_cap), max(32 << 20, need)))

    w_item = jnp.dtype(w_flat.dtype).itemsize
    p_item = jnp.dtype(b2.dtype).itemsize
    x_item = jnp.dtype(x.dtype).itemsize
    cost = pl.CostEstimate(
        flops=int(B * (2 * W * HH + HH + 2 * HH * H + H + 2 * H * W + W)),
        transcendentals=int(B * H),
        bytes_accessed=int(B * (2 * W * x_item + HH * w_item + 2 * H * p_item)
                           + (W * HH + HH * H + H * W) * 4),
    )

    out = pl.pallas_call(
        coupling_amor_kernel,
        out_shape=jax.ShapeDtypeStruct((B, W), x.dtype),
        grid_spec=pltpu.PrefetchScalarGridSpec(
            num_scalar_prefetch=0,
            grid=grid,
            in_specs=[
                pl.BlockSpec((tb, W), lambda i: (i, 0)),    # x        (streamed)
                pl.BlockSpec((W, HH), lambda i: (0, 0)),    # off replication (pinned)
                pl.BlockSpec((HH, H), lambda i: (0, 0)),    # segment-sum     (pinned)
                pl.BlockSpec((H, W), lambda i: (0, 0)),     # P_on^T          (pinned)
                pl.BlockSpec((tb, HH), lambda i: (i, 0)),   # w (dominant, lane-dense)
                pl.BlockSpec((tb, H), lambda i: (i, 0)),    # b
                pl.BlockSpec((tb, H), lambda i: (i, 0)),    # u
            ],
            out_specs=pl.BlockSpec((tb, W), lambda i: (i, 0)),
        ),
        compiler_params=pltpu.CompilerParams(
            dimension_semantics=("parallel",),
            vmem_limit_bytes=vmem_limit,
        ),
        cost_estimate=cost,
    )(x, off_rep_mat, seg, p_on_t, w_flat, b2, u2)
    return out


def _reference(x, u, w, b, P):
    """Pure-JAX reference mirroring the PyTorch forward exactly."""
    B, W = x.shape
    H = W // 2
    xp = x @ P
    xr = xp.reshape(B, H, 2)
    on, off = xr[:, :, 0], xr[:, :, 1]
    prod = jnp.einsum('bij,bj->bi', w, off) + b[..., 0]
    shift = u[..., 0] * jnp.tanh(prod)
    on = on + shift
    return jnp.stack((on, off), axis=2).reshape(B, W) @ P.T


if __name__ == "__main__":
    # Full-precision reference matmuls so the 1e-5 comparison is meaningful.
    jax.config.update("jax_default_matmul_precision", "highest")

    key = jax.random.PRNGKey(0)
    W = 32
    H = W // 2

    k1, k2, k3, k4, k5 = jax.random.split(key, 5)
    # Deterministic stand-in for torch.randperm / eye in __init__.
    perm = jax.random.permutation(k5, W)
    P = jnp.eye(W, dtype=jnp.float32)[perm, :]

    # --- Case 1: small batch, single tile, f32 params, strict tolerance.
    B = 4
    x = jax.random.normal(k1, (B, W), dtype=jnp.float32)
    u = jax.random.normal(k2, (B, H, 1), dtype=jnp.float32)
    w = jax.random.normal(k3, (B, H, H), dtype=jnp.float32)
    b = jax.random.normal(k4, (B, H, 1), dtype=jnp.float32)
    out = jax.block_until_ready(coupling_amor_forward(x, u, w, b, P, param_dtype=None))
    ref = _reference(x, u, w, b, P)
    assert out.shape == (B, W)
    assert jnp.allclose(out, ref, atol=1e-5, rtol=1e-5), "mismatch (small, f32)"

    # --- Case 2: multiple tiles + ragged last tile (no wrapper padding), f32.
    B2 = 20
    x2 = jax.random.normal(k1, (B2, W), dtype=jnp.float32)
    u2 = jax.random.normal(k2, (B2, H, 1), dtype=jnp.float32)
    w2 = jax.random.normal(k3, (B2, H, H), dtype=jnp.float32)
    b2 = jax.random.normal(k4, (B2, H, 1), dtype=jnp.float32)
    out2 = jax.block_until_ready(
        coupling_amor_forward(x2, u2, w2, b2, P, param_dtype=None, tb_max=8))
    ref2 = _reference(x2, u2, w2, b2, P)
    assert out2.shape == (B2, W)
    assert jnp.allclose(out2, ref2, atol=1e-5, rtol=1e-5), "mismatch (tiled, f32)"

    # --- Case 3: default bf16 param path, tiled; compare against a reference
    #     computed with identically bf16-quantized params.
    B3 = 40
    x3 = jax.random.normal(k1, (B3, W), dtype=jnp.float32)
    u3 = jax.random.normal(k2, (B3, H, 1), dtype=jnp.float32)
    w3 = jax.random.normal(k3, (B3, H, H), dtype=jnp.float32)
    b3 = jax.random.normal(k4, (B3, H, 1), dtype=jnp.float32)
    out3 = jax.block_until_ready(
        coupling_amor_forward(x3, u3, w3, b3, P, tb_max=16))   # bf16 default
    wq = w3.astype(jnp.bfloat16).astype(jnp.float32)
    uq = u3.astype(jnp.bfloat16).astype(jnp.float32)
    bq = b3.astype(jnp.bfloat16).astype(jnp.float32)
    ref3 = _reference(x3, uq, wq, bq, P)
    assert out3.shape == (B3, W)
    assert jnp.allclose(out3, ref3, atol=1e-4, rtol=1e-4), "mismatch (tiled, bf16)"

    print("KERNEL_OK")
</pallas_src>

<mosaic_0001>
module attributes {stable_mosaic.version = 11 : i64} {
  func.func @coupling_amor_kernel(%arg0: i32, %arg1: memref<4x32xf32, #tpu.memory_space<vmem>>, %arg2: memref<32x256xf32, #tpu.memory_space<vmem>>, %arg3: memref<256x16xf32, #tpu.memory_space<vmem>>, %arg4: memref<16x32xf32, #tpu.memory_space<vmem>>, %arg5: memref<4x256xf32, #tpu.memory_space<vmem>>, %arg6: memref<4x16xf32, #tpu.memory_space<vmem>>, %arg7: memref<4x16xf32, #tpu.memory_space<vmem>>, %arg8: memref<4x32xf32, #tpu.memory_space<vmem>>) attributes {dimension_semantics = [#tpu.dimension_semantics<parallel>], iteration_bounds = array<i64: 1>, scalar_prefetch = 0 : i64, scratch_operands = 0 : i64, tpu.core_type = #tpu.core_type<tc>, window_params = [{transform_indices = @transform_0, window_bounds = array<i64: 4, 32>}, {pipeline_mode = #tpu.pipeline_mode<synchronous>, transform_indices = @transform_1, window_bounds = array<i64: 32, 256>}, {pipeline_mode = #tpu.pipeline_mode<synchronous>, transform_indices = @transform_2, window_bounds = array<i64: 256, 16>}, {pipeline_mode = #tpu.pipeline_mode<synchronous>, transform_indices = @transform_3, window_bounds = array<i64: 16, 32>}, {transform_indices = @transform_4, window_bounds = array<i64: 4, 256>}, {transform_indices = @transform_5, window_bounds = array<i64: 4, 16>}, {transform_indices = @transform_6, window_bounds = array<i64: 4, 16>}, {transform_indices = @transform_7, window_bounds = array<i64: 4, 32>}]} {
    %c0 = arith.constant 0 : index
    %c0_0 = arith.constant 0 : index
    %0 = vector.load %arg1[%c0, %c0_0] : memref<4x32xf32, #tpu.memory_space<vmem>>, vector<4x32xf32>
    %c0_1 = arith.constant 0 : index
    %c0_2 = arith.constant 0 : index
    %1 = vector.load %arg2[%c0_1, %c0_2] : memref<32x256xf32, #tpu.memory_space<vmem>>, vector<32x256xf32>
    %cst = arith.constant dense<0.000000e+00> : vector<4x256xf32>
    %2 = tpu.matmul %0, %1, %cst {dimension_numbers = #tpu.dot_dimension_numbers<[1], [0], [0], [1], [0, 0, 1, 1], [], []>, precision = #tpu.contract_precision<fp32>} : vector<4x32xf32>, vector<32x256xf32>, vector<4x256xf32> -> vector<4x256xf32>
    %c0_3 = arith.constant 0 : index
    %c0_4 = arith.constant 0 : index
    %3 = vector.load %arg5[%c0_3, %c0_4] : memref<4x256xf32, #tpu.memory_space<vmem>>, vector<4x256xf32>
    %4 = arith.mulf %3, %2 : vector<4x256xf32>
    %c0_5 = arith.constant 0 : index
    %c0_6 = arith.constant 0 : index
    %5 = vector.load %arg3[%c0_5, %c0_6] : memref<256x16xf32, #tpu.memory_space<vmem>>, vector<256x16xf32>
    %cst_7 = arith.constant dense<0.000000e+00> : vector<4x16xf32>
    %6 = tpu.matmul %4, %5, %cst_7 {dimension_numbers = #tpu.dot_dimension_numbers<[1], [0], [0], [1], [0, 0, 1, 1], [], []>, precision = #tpu.contract_precision<fp32>} : vector<4x256xf32>, vector<256x16xf32>, vector<4x16xf32> -> vector<4x16xf32>
    %c0_8 = arith.constant 0 : index
    %c0_9 = arith.constant 0 : index
    %7 = vector.load %arg6[%c0_8, %c0_9] : memref<4x16xf32, #tpu.memory_space<vmem>>, vector<4x16xf32>
    %8 = arith.addf %6, %7 : vector<4x16xf32>
    %c0_10 = arith.constant 0 : index
    %c0_11 = arith.constant 0 : index
    %9 = vector.load %arg7[%c0_10, %c0_11] : memref<4x16xf32, #tpu.memory_space<vmem>>, vector<4x16xf32>
    %10 = math.tanh %8 : vector<4x16xf32>
    %11 = arith.mulf %9, %10 : vector<4x16xf32>
    %c0_12 = arith.constant 0 : index
    %c0_13 = arith.constant 0 : index
    %12 = vector.load %arg4[%c0_12, %c0_13] : memref<16x32xf32, #tpu.memory_space<vmem>>, vector<16x32xf32>
    %cst_14 = arith.constant dense<0.000000e+00> : vector<4x32xf32>
    %13 = tpu.matmul %11, %12, %cst_14 {dimension_numbers = #tpu.dot_dimension_numbers<[1], [0], [0], [1], [0, 0, 1, 1], [], []>, precision = #tpu.contract_precision<fp32>} : vector<4x16xf32>, vector<16x32xf32>, vector<4x32xf32> -> vector<4x32xf32>
    %14 = arith.addf %0, %13 : vector<4x32xf32>
    %c0_15 = arith.constant 0 : index
    %c0_16 = arith.constant 0 : index
    %15 = vector.load %arg8[%c0_15, %c0_16] : memref<4x32xf32, #tpu.memory_space<vmem>>, vector<4x32xf32>
    tpu.vector_store %arg8[%c0_15, %c0_16], %14 {strides = array<i32>} : memref<4x32xf32, #tpu.memory_space<vmem>>, vector<4x32xf32>,
    return
  }
  func.func @transform_0(%arg0: i32) -> (i32, i32) {
    %c0_i32 = arith.constant 0 : i32
    %c0_i32_0 = arith.constant 0 : i32
    return %arg0, %c0_i32 : i32, i32
  }
  func.func @transform_1(%arg0: i32) -> (i32, i32) {
    %c0_i32 = arith.constant 0 : i32
    %c0_i32_0 = arith.constant 0 : i32
    %c0_i32_1 = arith.constant 0 : i32
    return %c0_i32, %c0_i32_0 : i32, i32
  }
  func.func @transform_2(%arg0: i32) -> (i32, i32) {
    %c0_i32 = arith.constant 0 : i32
    %c0_i32_0 = arith.constant 0 : i32
    %c0_i32_1 = arith.constant 0 : i32
    return %c0_i32, %c0_i32_0 : i32, i32
  }
  func.func @transform_3(%arg0: i32) -> (i32, i32) {
    %c0_i32 = arith.constant 0 : i32
    %c0_i32_0 = arith.constant 0 : i32
    %c0_i32_1 = arith.constant 0 : i32
    return %c0_i32, %c0_i32_0 : i32, i32
  }
  func.func @transform_4(%arg0: i32) -> (i32, i32) {
    %c0_i32 = arith.constant 0 : i32
    %c0_i32_0 = arith.constant 0 : i32
    return %arg0, %c0_i32 : i32, i32
  }
  func.func @transform_5(%arg0: i32) -> (i32, i32) {
    %c0_i32 = arith.constant 0 : i32
    %c0_i32_0 = arith.constant 0 : i32
    return %arg0, %c0_i32 : i32, i32
  }
  func.func @transform_6(%arg0: i32) -> (i32, i32) {
    %c0_i32 = arith.constant 0 : i32
    %c0_i32_0 = arith.constant 0 : i32
    return %arg0, %c0_i32 : i32, i32
  }
  func.func @transform_7(%arg0: i32) -> (i32, i32) {
    %c0_i32 = arith.constant 0 : i32
    %c0_i32_0 = arith.constant 0 : i32
    return %arg0, %c0_i32 : i32, i32
  }
}

</mosaic_0001>

<bundles_post_ra>
// kernel: tpu_custom_call.1
= control target key start
LH: loop header
LB: loop body
LE: loop exit
PB: predicated region body
PF: predicated region fallthrough
CT: control target
= control target key end

     0   :  { %vm36_vm0 = vcmask 261120   ;;  %v3116_v9 = vmov 0.0   ;;  %s3108_s0 = inlined_call_operand.vmem [shape: f32[4,32], index: 0, kind: input, shape index: {}]   ;;  %s3109_s1 = inlined_call_operand.vmem [shape: f32[32,256], index: 1, kind: input, shape index: {}]   ;;  %s3110_s2 = inlined_call_operand.vmem [shape: f32[256,16], index: 2, kind: input, shape index: {}]   ;;  %s3111_s3 = inlined_call_operand.vmem [shape: f32[16,32], index: 3, kind: input, shape index: {}]   ;;  %s3112_s4 = inlined_call_operand.vmem [shape: f32[4,256], index: 4, kind: input, shape index: {}]   ;;  %s3113_s5 = inlined_call_operand.vmem [shape: f32[4,16], index: 5, kind: input, shape index: {}]   ;;  %s3114_s6 = inlined_call_operand.vmem [shape: f32[4,16], index: 6, kind: input, shape index: {}]   ;;  %s3115_s7 = inlined_call_operand.hbm [shape: f32[4,32], index: 7, kind: output, shape index: {}]  }
   0x1   :  { %v35_v0 = vld [vmem:[%s3109_s1 + $0x38] sm:$0xff]  ;;  %v34_v1 = vld [vmem:[%s3109_s1 + $0x30] sm:$0xff]  ;;  %v33_v2 = vld [vmem:[%s3109_s1 + $0x28] sm:$0xff]  ;;  %112 = vmatprep.mubr.f32.mxu0 %v3116_v9  ;;  %228 = vmatprep.mubr.f32.mxu1 %v3116_v9 }
   0x2   :  { %v2322_v3 = vand.u32 4294901760, %v35_v0  ;;  %v2324_v4 = vand.u32 4294901760, %v34_v1  ;;  %v2326_v5 = vand.u32 4294901760, %v33_v2  ;;  %v32_v6 = vld [vmem:[%s3109_s1 + $0x20] sm:$0xff]  ;;  %v31_v7 = vld [vmem:[%s3109_s1 + $0x18] sm:$0xff]  ;;  %v30_v8 = vld [vmem:[%s3109_s1 + $0x10] sm:$0xff] }
   0x3   :  { %v2339_v10 = vand.u32 4294901760, %v32_v6  ;;  %v2341_v11 = vand.u32 4294901760, %v31_v7  ;;  %v2343_v12 = vand.u32 4294901760, %v30_v8  ;;  %v29_v13 = vld [vmem:[%s3109_s1 + $0x8] sm:$0xff]  ;;  %v28_v14 = vld [vmem:[%s3109_s1] sm:$0xff] }
   0x4   :  { %65 = vmatprep.subr.mxu0 %v2322_v3  ;;  %v2352_v15 = vand.u32 4294901760, %v29_v13  ;;  %v2355_v16 = vsub.f32 %v35_v0, %v2322_v3  ;;  %v2357_v17 = vand.u32 4294901760, %v28_v14  ;;  %v2360_v18 = vsub.f32 %v34_v1, %v2324_v4  ;;  %v27_v19 = vld [vmem:[%s3108_s0] sm:$0xf] }
   0x5   :  { %12 = vsyncpa [#allocation3], 0  ;;  %67 = vmatpush1.msra.mxu0 %v2324_v4  ;;  %v2367_v20 = vsub.f32 %v33_v2, %v2326_v5  ;;  %v38_v21 = vsel %vm36_vm0, %v27_v19, 0  ;;  %v2371_v22 = vsub.f32 %v32_v6, %v2339_v10  ;;  %v2374_v23 = vsub.f32 %v31_v7, %v2341_v11  ;;  %v620_v56 = vld [vmem:[%s3110_s2 + $0xf8] sm:$0xff]  ;;  %v619_v60 = vld [vmem:[%s3110_s2 + $0xf0] sm:$0xff] }
   0x6   :  { %69 = vmatprep.subr.mxu0 %v2326_v5  ;;  %v150_v24 = vand.u32 4294901760, %v2355_v16  ;;  %v156_v25 = vand.u32 4294901760, %v2360_v18  ;;  %v2379_v26 = vand.u32 4294901760, %v38_v21  ;;  %v2382_v27 = vsub.f32 %v30_v8, %v2343_v12  ;;  %v604_v58 = vld [vmem:[%s3110_s2 + $0x78] sm:$0xff]  ;;  %v603_v63 = vld [vmem:[%s3110_s2 + $0x70] sm:$0xff]  ;;  %v618_v2 = vld [vmem:[%s3110_s2 + $0xe8] sm:$0xff] }
   0x7   :  { %71 = vmatpush1.msra.mxu0 %v2339_v10  ;;  %v162_v28 = vand.u32 4294901760, %v2367_v20  ;;  %v168_v29 = vand.u32 4294901760, %v2371_v22  ;;  %v174_v30 = vand.u32 4294901760, %v2374_v23  ;;  %v2389_v31 = vsub.f32 %v29_v13, %v2352_v15  ;;  %v602_v6 = vld [vmem:[%s3110_s2 + $0x68] sm:$0xff] }
   0x8   :  { %73 = vmatprep.subr.mxu0 %v2341_v11  ;;  %v151_v32 = vsub.f32 %v2355_v16, %v150_v24  ;;  %v157_v33 = vsub.f32 %v2360_v18, %v156_v25  ;;  %v114_v34 = vsub.f32 %v38_v21, %v2379_v26  ;;  %v180_v35 = vand.u32 4294901760, %v2382_v27  ;;  %v616_v21 = vld [vmem:[%s3110_s2 + $0xd8] sm:$0xff] }
   0x9   :  { %75 = vmatpush1.msra.mxu0 %v2343_v12  ;;  %v163_v36 = vsub.f32 %v2367_v20, %v162_v28  ;;  %v169_v37 = vsub.f32 %v2371_v22, %v168_v29  ;;  %v175_v38 = vsub.f32 %v2374_v23, %v174_v30  ;;  %v186_v39 = vand.u32 4294901760, %v2389_v31 }
   0xa   :  { %77 = vmatprep.subr.mxu0 %v2352_v15  ;;  %v152_v40 = vand.u32 4294901760, %v151_v32  ;;  %v158_v41 = vand.u32 4294901760, %v157_v33  ;;  %v115_v42 = vand.u32 4294901760, %v114_v34  ;;  %v181_v43 = vsub.f32 %v2382_v27, %v180_v35 }
   0xb   :  { %79 = vmatpush1.msra.mxu0 %v2357_v17  ;;  %v164_v44 = vand.u32 4294901760, %v163_v36  ;;  %v170_v45 = vand.u32 4294901760, %v169_v37  ;;  %v187_v46 = vsub.f32 %v2389_v31, %v186_v39  ;;  %v176_v48 = vand.u32 4294901760, %v175_v38  ;;  %v599_v36 = vld [vmem:[%s3110_s2 + $0x50] sm:$0xff] }
   0xc   :  { %153 = vmatprep.subr.mxu1 %v152_v40  ;;  %262 = vmatprep.subr.mxu0 %v2355_v16  ;;  %v116_v47 = vsub.f32 %v114_v34, %v115_v42  ;;  %v191_v49 = vsub.f32 %v28_v14, %v2357_v17  ;;  %v182_v50 = vand.u32 4294901760, %v181_v43  ;;  %v2439_v57 = vand.u32 4294901760, %v620_v56  ;;  %v601_v16 = vld [vmem:[%s3110_s2 + $0x60] sm:$0xff] }
   0xd   :  { %159 = vmatpush1.msra.mxu1 %v158_v41  ;;  %v188_v52 = vand.u32 4294901760, %v187_v46  ;;  %v2444_v59 = vand.u32 4294901760, %v604_v58  ;;  %v2452_v62 = vand.u32 4294901760, %v619_v60  ;;  %v2461_v1 = vand.u32 4294901760, %v603_v63  ;;  %v614_v41 = vld [vmem:[%s3110_s2 + $0xc8] sm:$0xff] }
   0xe   :  { %165 = vmatprep.subr.mxu1 %v164_v44  ;;  %v117_v51 = vand.u32 4294901760, %v116_v47  ;;  %v192_v53 = vand.u32 4294901760, %v191_v49  ;;  %3192 = vst [vmem:[#allocation5_spill] sm:$0xff] %v2439_v57  ;;  %v2450_v61 = vsub.f32 %v620_v56, %v2439_v57  ;;  %v598_v46 = vld [vmem:[%s3110_s2 + $0x48] sm:$0xff]  ;;  %v597_v56 = vld [vmem:[%s3110_s2 + $0x40] sm:$0xff]  ;;  %vm2271_vm1 = vmmov 0  }
   0xf   :  { %171 = vmatpush1.msra.mxu1 %v170_v45  ;;  %v2459_v0 = vsub.f32 %v604_v58, %v2444_v59  ;;  %v2479_v8 = vsub.f32 %v603_v63, %v2461_v1  ;;  %vm1492_vm2 = vcmask 130048   ;;  %vm1956_vm3 = vcmask 257024  }
  0x10   :  { %118 = vmatmul.mubr.f32.vlgmr.msra.gmra.mxu0 %v117_v51  ;;  %177 = vmatprep.subr.mxu1 %v176_v48  ;;  %v193_v54 = vsub.f32 %v191_v49, %v192_v53  ;;  %3193 = vst [vmem:[#allocation6_spill] sm:$0xff] %v2450_v61  ;;  %v613_v51 = vld [vmem:[%s3110_s2 + $0xc0] sm:$0xff] }
  0x11   :  { %265 = vmatpush1.msra.mxu0 %v2360_v18  ;;  %183 = vmatpush1.msra.mxu1 %v182_v50  ;;  %v3136_v7 = vand.u32 4294901760, %v2459_v0  ;;  %v3133_v18 = vand.u32 4294901760, %v2479_v8  ;;  %v2571_v50 = vand.u32 4294901760, %v599_v36 }
  0x12   :  { %268 = vmatprep.subr.mxu0 %v2367_v20  ;;  %189 = vmatprep.subr.mxu1 %v188_v52  ;;  %v194_v55 = vand.u32 4294901760, %v193_v54  ;;  %v2507_v20 = vand.u32 4294901760, %v601_v16 }
  0x13   :  { %271 = vmatpush1.msra.mxu0 %v2371_v22  ;;  %316 = vmatprep.mubr.f32.mxu0 %v3116_v9  ;;  %v2589_v63 = vsub.f32 %v599_v36, %v2571_v50 }
  0x14   :  { %274 = vmatprep.subr.mxu0 %v2374_v23  ;;  %195 = vmatpush1.msra.mxu1 %v194_v55  ;;  %v2581_v55 = vand.u32 4294901760, %v614_v41 }
  0x15   :  { %277 = vmatpush1.msra.mxu0 %v2382_v27  ;;  %230 = vmatmul.mubr.f32.vlgmr.msra.gmra.mxu1 %v2379_v26 }
  0x16   :  { %280 = vmatprep.subr.mxu0 %v2389_v31  ;;  %350 = vmatprep.subr.mxu1 %v2322_v3  ;;  %v615_v31 = vld [vmem:[%s3110_s2 + $0xd0] sm:$0xff] }
  0x17   :  { %283 = vmatpush1.msra.mxu0 %v191_v49  ;;  %352 = vmatpush1.msra.mxu1 %v2324_v4  ;;  %v2559_v45 = vand.u32 4294901760, %v615_v31 }
  0x18   :  { %319 = vmatmul.mubr.f32.vlgmr.msra.gmra.mxu0 %v114_v34  ;;  %354 = vmatprep.subr.mxu1 %v2326_v5 }
  0x19   :  { %434 = vmatprep.subr.mxu0 %v150_v24  ;;  %356 = vmatpush1.msra.mxu1 %v2339_v10  ;;  %v2579_v54 = vsub.f32 %v615_v31, %v2559_v45 }
  0x1a   :  { %438 = vmatpush1.msra.mxu0 %v156_v25  ;;  %358 = vmatprep.subr.mxu1 %v2341_v11 }
  0x1b   :  { %442 = vmatprep.subr.mxu0 %v162_v28  ;;  %360 = vmatpush1.msra.mxu1 %v2343_v12  ;;  %v748_v28 = vsub.f32 %v2479_v8, %v3133_v18 }
  0x1c   :  { %446 = vmatpush1.msra.mxu0 %v168_v29  ;;  %362 = vmatprep.subr.mxu1 %v2352_v15 }
  0x1d   :  { %450 = vmatprep.subr.mxu0 %v174_v30  ;;  %364 = vmatpush1.msra.mxu1 %v2357_v17  ;;  %v2529_v30 = vsub.f32 %v601_v16, %v2507_v20  ;;  %v749_v37 = vand.u32 4294901760, %v748_v28  ;;  %v2601_v16 = vand.u32 4294901760, %v613_v51 }
  0x1e   :  { %397 = vmatprep.mubr.f32.mxu1 %v3116_v9  ;;  %454 = vmatpush1.msra.mxu0 %v180_v35  ;;  %v2539_v35 = vand.u32 4294901760, %v616_v21 }
  0x1f   :  { %401 = vmatmul.mubr.f32.vlgmr.msra.gmra.mxu1 %v115_v42  ;;  %458 = vmatprep.subr.mxu0 %v186_v39  ;;  %v3127_v39 = vand.u32 4294901760, %v2529_v30 }
  0x20   :  { %528 = vmatprep.subr.mxu1 %v2322_v3  ;;  %462 = vmatpush1.msra.mxu0 %v192_v53  ;;  %v3137_v3 = vand.u32 4294901760, %v2450_v61  ;;  %v2557_v44 = vsub.f32 %v616_v21, %v2539_v35  ;;  %v3121_v21 = vand.u32 4294901760, %v2589_v63 }
  0x21   :  { %495 = vmatprep.mubr.f32.mxu0 %v3116_v9  ;;  %530 = vmatpush1.msra.mxu1 %v2324_v4  ;;  %v2469_v4 = vsub.f32 %v619_v60, %v2452_v62  ;;  %v762_v48 = vsub.f32 %v2529_v30, %v3127_v39 }
  0x22   :  { %497 = vmatmul.mubr.f32.vlgmr.msra.gmra.mxu0 %v2379_v26  ;;  %532 = vmatprep.subr.mxu1 %v2326_v5  ;;  %v2471_v5 = vand.u32 4294901760, %v618_v2  ;;  %v3125_v53 = vand.u32 4294901760, %v2557_v44 }
  0x23   :  { %534 = vmatpush1.msra.mxu1 %v2339_v10  ;;  %575 = vmatprep.mubr.f32.mxu1 %v3116_v9  ;;  %v2481_v10 = vand.u32 4294901760, %v602_v6  ;;  %v3134_v13 = vand.u32 4294901760, %v2469_v4  ;;  %v763_v58 = vand.u32 4294901760, %v762_v48  ;;  %v594_v9 = vld [vmem:[%s3110_s2 + $0x28] sm:$0xff] }
  0x24   :  { %536 = vmatprep.subr.mxu1 %v2341_v11  ;;  %1972 = vmatprep.subr.mxu0 %v2439_v57  ;;  %v617_v11 = vld [vmem:[%s3110_s2 + $0xe0] sm:$0xff]  ;;  %v2492_v14 = vsub.f32 %v618_v2, %v2471_v5  ;;  %v2591_v2 = vand.u32 4294901760, %v598_v46 }
  0x25   :  { %538 = vmatpush1.msra.mxu1 %v2343_v12  ;;  %1973 = vmatpush3.msra.mxu0 %v2444_v59  ;;  %v853_v12 = vsub.f32 %v2450_v61, %v3137_v3  ;;  %v2505_v19 = vsub.f32 %v602_v6, %v2481_v10  ;;  %v860_v23 = vsub.f32 %v2469_v4, %v3134_v13 }
  0x26   :  { %540 = vmatprep.subr.mxu1 %v2352_v15  ;;  %1974 = vmatprep.subr.mxu0 %v2452_v62  ;;  %v2494_v15 = vand.u32 4294901760, %v617_v11  ;;  %v3131_v24 = vand.u32 4294901760, %v2492_v14  ;;  %v881_v6 = vsub.f32 %v2557_v44, %v3125_v53 }
  0x27   :  { %542 = vmatpush1.msra.mxu1 %v2357_v17  ;;  %1975 = vmatpush3.msra.mxu0 %v2461_v1  ;;  %v741_v17 = vsub.f32 %v2459_v0, %v3136_v7  ;;  %v854_v22 = vand.u32 4294901760, %v853_v12  ;;  %v3130_v29 = vand.u32 4294901760, %v2505_v19  ;;  %v861_v32 = vand.u32 4294901760, %v860_v23 }
  0x28   :  { %577 = vmatmul.mubr.f32.vlgmr.msra.gmra.mxu1 %v2379_v26  ;;  %1976 = vmatprep.subr.mxu0 %v2471_v5  ;;  %v2518_v25 = vsub.f32 %v617_v11, %v2494_v15  ;;  %v600_v26 = vld [vmem:[%s3110_s2 + $0x58] sm:$0xff]  ;;  %v867_v33 = vsub.f32 %v2492_v14, %v3131_v24  ;;  %v3123_v11 = vand.u32 4294901760, %v2579_v54  ;;  %v2599_v12 = vsub.f32 %v614_v41, %v2581_v55 }
  0x29   :  { %1977 = vmatpush3.msra.mxu0 %v2481_v10  ;;  %v742_v27 = vand.u32 4294901760, %v741_v17  ;;  %2007 = vmatprep.subr.mxu1 %v854_v22  ;;  %v755_v38 = vsub.f32 %v2505_v19, %v3130_v29  ;;  %v2548_v40 = vand.u32 4294901760, %v600_v26  ;;  %v2609_v22 = vsub.f32 %v598_v46, %v2591_v2 }
  0x2a   :  { %1978 = vmatprep.subr.mxu0 %v2494_v15  ;;  %v3129_v34 = vand.u32 4294901760, %v2518_v25  ;;  %v868_v42 = vand.u32 4294901760, %v867_v33  ;;  %v2611_v23 = vand.u32 4294901760, %v597_v56  ;;  %v888_v28 = vsub.f32 %v2579_v54, %v3123_v11  ;;  %v596_v33 = vld [vmem:[%s3110_s2 + $0x38] sm:$0xff] }
  0x2b   :  { %1979 = vmatpush3.msra.mxu0 %v2507_v20  ;;  %2008 = vmatpush3.msra.mxu1 %v742_v27  ;;  %v756_v47 = vand.u32 4294901760, %v755_v38  ;;  %v2569_v49 = vsub.f32 %v600_v26, %v2548_v40  ;;  %v612_v26 = vld [vmem:[%s3110_s2 + $0xb8] sm:$0xff]  ;;  %v882_v27 = vand.u32 4294901760, %v881_v6  ;;  %v3120_v31 = vand.u32 4294901760, %v2599_v12 }
  0x2c   :  { %2009 = vmatprep.subr.mxu1 %v861_v32  ;;  %v874_v43 = vsub.f32 %v2518_v25, %v3129_v34  ;;  %1980 = vmatprep.subr.mxu0 %v2539_v35  ;;  %v2622_v32 = vsub.f32 %v613_v51, %v2601_v16  ;;  %v3118_v38 = vand.u32 4294901760, %v2609_v22  ;;  %v2633_v41 = vsub.f32 %v597_v56, %v2611_v23  ;;  %v595_v51 = vld [vmem:[%s3110_s2 + $0x30] sm:$0xff] }
  0x2d   :  { %2010 = vmatpush3.msra.mxu1 %v749_v37  ;;  %1981 = vmatpush3.msra.mxu0 %v2548_v40  ;;  %v3124_v60 = vand.u32 4294901760, %v2569_v49  ;;  %v776_v37 = vsub.f32 %v2589_v63, %v3121_v21  ;;  %v895_v46 = vsub.f32 %v2599_v12, %v3120_v31  ;;  %v2643_v48 = vand.u32 4294901760, %v612_v26 }
  0x2e   :  { %2011 = vmatprep.subr.mxu1 %v868_v42  ;;  %v875_v52 = vand.u32 4294901760, %v874_v43  ;;  %1982 = vmatprep.subr.mxu0 %v2559_v45  ;;  %v611_v42 = vld [vmem:[%s3110_s2 + $0xb0] sm:$0xff]  ;;  %v889_v43 = vand.u32 4294901760, %v888_v28  ;;  %v783_v56 = vsub.f32 %v2609_v22, %v3118_v38  ;;  %v2652_v6 = vand.u32 4294901760, %v596_v33 }
  0x2f   :  { %2012 = vmatpush3.msra.mxu1 %v756_v47  ;;  %1983 = vmatpush3.msra.mxu0 %v2571_v50  ;;  %v769_v17 = vsub.f32 %v2569_v49, %v3124_v60  ;;  %v3119_v47 = vand.u32 4294901760, %v2622_v32 }
  0x30   :  { %2013 = vmatprep.subr.mxu1 %v875_v52  ;;  %1984 = vmatprep.subr.mxu0 %v2581_v55  ;;  %v777_v52 = vand.u32 4294901760, %v776_v37  ;;  %v2663_v37 = vand.u32 4294901760, %v611_v42  ;;  %v784_v38 = vand.u32 4294901760, %v783_v56 }
  0x31   :  { %2014 = vmatpush3.msra.mxu1 %v763_v58  ;;  %1985 = vmatpush3.msra.mxu0 %v2591_v2  ;;  %v770_v36 = vand.u32 4294901760, %v769_v17  ;;  %v3122_v58 = vand.u32 4294901760, %v2633_v41  ;;  %v610_v17 = vld [vmem:[%s3110_s2 + $0xa8] sm:$0xff]  ;;  %v902_v28 = vsub.f32 %v2622_v32, %v3119_v47  ;;  %v2675_v47 = vand.u32 4294901760, %v595_v51 }
  0x32   :  { %1986 = vmatprep.subr.mxu0 %v2601_v16  ;;  %2015 = vmatprep.subr.mxu1 %v882_v27  ;;  %v896_v27 = vand.u32 4294901760, %v895_v46  ;;  %v2673_v46 = vsub.f32 %v596_v33, %v2652_v6  ;;  %v2683_v56 = vsub.f32 %v611_v42, %v2663_v37  ;;  %v2685_v21 = vand.u32 4294901760, %v610_v17  ;;  %v593_v33 = vld [vmem:[%s3110_s2 + $0x20] sm:$0xff] }
  0x33   :  { %1987 = vmatpush3.msra.mxu0 %v2611_v23  ;;  %2016 = vmatpush3.msra.mxu1 %v770_v36  ;;  %v2661_v36 = vsub.f32 %v612_v26, %v2643_v48  ;;  %v609_v26 = vld [vmem:[%s3110_s2 + $0xa0] sm:$0xff]  ;;  %v903_v31 = vand.u32 4294901760, %v902_v28  ;;  %v2695_v28 = vand.u32 4294901760, %v594_v9 }
  0x34   :  { %2017 = vmatprep.subr.mxu1 %v889_v43  ;;  %1988 = vmatprep.subr.mxu0 %v2643_v48  ;;  %v790_v43 = vsub.f32 %v2633_v41, %v3122_v58  ;;  %3194 = vst [vmem:[#allocation7_spill] sm:$0xff] %v2683_v56  ;;  %v3128_v11 = vand.u32 4294901760, %v2673_v46  ;;  %v3132_v60 = vand.u32 4294901760, %v2683_v56  ;;  %v2703_v53 = vsub.f32 %v610_v17, %v2685_v21  ;;  %v608_v17 = vld [vmem:[%s3110_s2 + $0x98] sm:$0xff] }
  0x35   :  { %2018 = vmatpush3.msra.mxu1 %v777_v52  ;;  %1989 = vmatpush3.msra.mxu0 %v2652_v6  ;;  %v3126_v52 = vand.u32 4294901760, %v2661_v36 }
  0x36   :  { %2019 = vmatprep.subr.mxu1 %v896_v27  ;;  %1990 = vmatprep.subr.mxu0 %v2663_v37  ;;  %v791_v58 = vand.u32 4294901760, %v790_v43  ;;  %v2693_v27 = vsub.f32 %v595_v51, %v2675_v47  ;;  %3196 = vst [vmem:[#allocation9_spill] sm:$0xff] %v2703_v53  ;;  %v797_v51 = vsub.f32 %v2673_v46, %v3128_v11  ;;  %v3138_v11 = vand.u32 4294901760, %v2703_v53 }
  0x37   :  { %2020 = vmatpush3.msra.mxu1 %v784_v38  ;;  %1991 = vmatpush3.msra.mxu0 %v2675_v47  ;;  %v909_v42 = vsub.f32 %v2661_v36, %v3126_v52  ;;  %v2705_v38 = vand.u32 4294901760, %v609_v26  ;;  %v2713_v43 = vsub.f32 %v594_v9, %v2695_v28  ;;  %v2715_v52 = vand.u32 4294901760, %v593_v33  ;;  %v592_v9 = vld [vmem:[%s3110_s2 + $0x18] sm:$0xff] }
  0x38   :  { %3195 = vst [vmem:[#allocation8_spill] sm:$0xff] %v2693_v27  ;;  %2021 = vmatprep.subr.mxu1 %v903_v31  ;;  %1992 = vmatprep.subr.mxu0 %v2685_v21  ;;  %v3135_v31 = vand.u32 4294901760, %v2693_v27  ;;  %v798_v29 = vand.u32 4294901760, %v797_v51  ;;  %v923_v51 = vsub.f32 %v2703_v53, %v3138_v11  ;;  %v606_v11 = vld [vmem:[%s3110_s2 + $0x88] sm:$0xff] }
  0x39   :  { %2022 = vmatpush3.msra.mxu1 %v791_v58  ;;  %3197 = vst [vmem:[#allocation10_spill] sm:$0xff] %v2713_v43  ;;  %1993 = vmatpush3.msra.mxu0 %v2695_v28  ;;  %v910_v39 = vand.u32 4294901760, %v909_v42  ;;  %v916_v58 = vsub.f32 %v2683_v56, %v3132_v60  ;;  %v2726_v34 = vsub.f32 %v609_v26, %v2705_v38  ;;  %v3143_v24 = vand.u32 4294901760, %v2713_v43  ;;  %v607_v26 = vld [vmem:[%s3110_s2 + $0x90] sm:$0xff] }
  0x3a   :  { %1994 = vmatprep.subr.mxu0 %v2705_v38  ;;  %v804_v42 = vsub.f32 %v2693_v27, %v3135_v31  ;;  %v2737_v60 = vsub.f32 %v593_v33, %v2715_v52  ;;  %v2747_v31 = vand.u32 4294901760, %v608_v17  ;;  %v591_v33 = vld [vmem:[%s3110_s2 + $0x10] sm:$0xff]  ;;  %v924_v13 = vand.u32 4294901760, %v923_v51 }
  0x3b   :  { %3198 = vst [vmem:[#allocation11_spill] sm:$0xff] %v2726_v34  ;;  %1995 = vmatpush3.msra.mxu0 %v2715_v52  ;;  %2023 = vmatprep.subr.mxu1 %v910_v39  ;;  %v917_v18 = vand.u32 4294901760, %v916_v58  ;;  %v811_v3 = vsub.f32 %v2713_v43, %v3143_v24  ;;  %v2756_v58 = vand.u32 4294901760, %v592_v9  ;;  %v3201_v53 = vand.u32 4294901760, %v2726_v34  ;;  %v590_v24 = vld [vmem:[%s3110_s2 + $0x8] sm:$0xff] }
  0x3c   :  { %3199 = vst [vmem:[#allocation12_spill] sm:$0xff] %v2737_v60  ;;  %2024 = vmatpush3.msra.mxu1 %v798_v29  ;;  %v805_v7 = vand.u32 4294901760, %v804_v42  ;;  %v2765_v29 = vsub.f32 %v608_v17, %v2747_v31  ;;  %v2767_v42 = vand.u32 4294901760, %v607_v26  ;;  %1996 = vmatprep.subr.mxu0 %v2747_v31  ;;  %v605_v17 = vld [vmem:[%s3110_s2 + $0x80] sm:$0xff]  ;;  %v2789_v56 = vand.u32 4294901760, %v606_v11 }
  0x3d   :  { %3200 = vst [vmem:[#allocation13_spill] sm:$0xff] %v2756_v58  ;;  %2025 = vmatprep.subr.mxu1 %v917_v18  ;;  %v930_v27 = vsub.f32 %v2726_v34, %v3201_v53  ;;  %v812_v39 = vand.u32 4294901760, %v811_v3  ;;  %v3204_v18 = vand.u32 4294901760, %v2737_v60  ;;  %v2777_v43 = vsub.f32 %v592_v9, %v2756_v58  ;;  %1997 = vmatpush3.msra.mxu0 %v2756_v58  ;;  %v589_v9 = vld [vmem:[%s3110_s2] sm:$0xff] }
  0x3e   :  { %3202 = vst [vmem:[#allocation14_spill] sm:$0xff] %v2765_v29  ;;  %3203 = vst [vmem:[#allocation15_spill] sm:$0xff] %v2767_v42  ;;  %2026 = vmatpush3.msra.mxu1 %v805_v7  ;;  %v2779_v53 = vand.u32 4294901760, %v591_v33  ;;  %v3156_v7 = vand.u32 4294901760, %v2765_v29  ;;  %v2787_v3 = vsub.f32 %v607_v26, %v2767_v42  ;;  %1998 = vmatprep.subr.mxu0 %v2767_v42 }
  0x3f   :  { %v818_v51 = vsub.f32 %v2737_v60, %v3204_v18  ;;  %3205 = vst [vmem:[#allocation16_spill] sm:$0xff] %v2777_v43  ;;  %2027 = vmatprep.subr.mxu1 %v924_v13  ;;  %v931_v34 = vand.u32 4294901760, %v930_v27  ;;  %3208 = vst [vmem:[#allocation19_spill] sm:$0xff] %v2789_v56  ;;  %v3161_v60 = vand.u32 4294901760, %v2777_v43  ;;  %v2799_v27 = vand.u32 4294901760, %v590_v24 }
  0x40   :  { %3206 = vst [vmem:[#allocation17_spill] sm:$0xff] %v2779_v53  ;;  %3207 = vst [vmem:[#allocation18_spill] sm:$0xff] %v2787_v3  ;;  %2028 = vmatpush3.msra.mxu1 %v812_v39  ;;  %v2797_v13 = vsub.f32 %v591_v33, %v2779_v53  ;;  %1999 = vmatpush3.msra.mxu0 %v2779_v53  ;;  %v937_v26 = vsub.f32 %v2765_v29, %v3156_v7  ;;  %v3164_v58 = vand.u32 4294901760, %v2787_v3 }
  0x41   :  { %v819_v18 = vand.u32 4294901760, %v818_v51  ;;  %3210 = vst [vmem:[#allocation21_spill] sm:$0xff] %v2799_v27  ;;  %2029 = vmatprep.subr.mxu1 %v931_v34  ;;  %v2807_v42 = vsub.f32 %v606_v11, %v2789_v56  ;;  %v2809_v39 = vand.u32 4294901760, %v605_v17  ;;  %2000 = vmatprep.subr.mxu0 %v2789_v56  ;;  %v825_v33 = vsub.f32 %v2777_v43, %v3161_v60 }
  0x42   :  { %3209 = vst [vmem:[#allocation20_spill] sm:$0xff] %v2797_v13  ;;  %v3167_v34 = vand.u32 4294901760, %v2797_v13  ;;  %v2817_v51 = vsub.f32 %v590_v24, %v2799_v27  ;;  %v2819_v7 = vand.u32 4294901760, %v589_v9  ;;  %2001 = vmatpush3.msra.mxu0 %v2799_v27  ;;  %v938_v11 = vand.u32 4294901760, %v937_v26 }
  0x43   :  { %3211 = vst [vmem:[#allocation22_spill] sm:$0xff] %v2807_v42  ;;  %3212 = vst [vmem:[#allocation23_spill] sm:$0xff] %v2809_v39  ;;  %2030 = vmatpush3.msra.mxu1 %v819_v18  ;;  %v944_v29 = vsub.f32 %v2787_v3, %v3164_v58  ;;  %v3170_v18 = vand.u32 4294901760, %v2807_v42  ;;  %v2827_v56 = vsub.f32 %v605_v17, %v2809_v39  ;;  %2002 = vmatprep.subr.mxu0 %v2809_v39 }
  0x44   :  { %3213 = vst [vmem:[#allocation24_spill] sm:$0xff] %v2817_v51  ;;  %3214 = vst [vmem:[#allocation25_spill] sm:$0xff] %v2819_v7  ;;  %v826_v60 = vand.u32 4294901760, %v825_v33  ;;  %v832_v24 = vsub.f32 %v2797_v13, %v3167_v34  ;;  %v3171_v43 = vand.u32 4294901760, %v2817_v51  ;;  %v2835_v26 = vsub.f32 %v589_v9, %v2819_v7  ;;  %2003 = vmatpush3.msra.mxu0 %v2819_v7 }
  0x45   :  { %3215 = vst [vmem:[#allocation26_spill] sm:$0xff] %v2827_v56  ;;  %2031 = vmatprep.subr.mxu1 %v938_v11  ;;  %v945_v58 = vand.u32 4294901760, %v944_v29  ;;  %v951_v17 = vsub.f32 %v2807_v42, %v3170_v18  ;;  %v3175_v3 = vand.u32 4294901760, %v2827_v56  ;;  %2042 = vmatprep.subr.mxu0 %v2450_v61 }
  0x46   :  { %3216 = vst [vmem:[#allocation27_spill] sm:$0xff] %v2835_v26  ;;  %2032 = vmatpush3.msra.mxu1 %v826_v60  ;;  %v833_v33 = vand.u32 4294901760, %v832_v24  ;;  %v839_v34 = vsub.f32 %v2817_v51, %v3171_v43  ;;  %v3182_v9 = vand.u32 4294901760, %v2835_v26 }
  0x47   :  { %2033 = vmatprep.subr.mxu1 %v945_v58  ;;  %v952_v13 = vand.u32 4294901760, %v951_v17  ;;  %v958_v29 = vsub.f32 %v2827_v56, %v3175_v3 }
  0x48   :  { %2034 = vmatpush3.msra.mxu1 %v833_v33  ;;  %v840_v11 = vand.u32 4294901760, %v839_v34  ;;  %v846_v18 = vsub.f32 %v2835_v26, %v3182_v9 }
  0x49   :  { %2035 = vmatprep.subr.mxu1 %v952_v13  ;;  %v959_v60 = vand.u32 4294901760, %v958_v29 }
  0x4a   :  { %2036 = vmatpush3.msra.mxu1 %v840_v11  ;;  %v847_v24 = vand.u32 4294901760, %v846_v18 }
  0x4b   :  { %2037 = vmatprep.subr.mxu1 %v959_v60 }
  0x4c   :  { %2038 = vmatpush3.msra.mxu1 %v847_v24 }
  0x4d   :  { %2077 = vmatprep.subr.mxu1 %v2439_v57 }
  0xd0   :  { %v119_v58 = vpop.f32.mrf.mxu0 }
  0xd2   :  { %v121_v17 = vpop.f32.mrf.mxu0 }
  0xd5   :  { %v231_v43 = vpop.f32.mrf.mxu1 }
  0xd6   :  { %v232_v3 = vadd.f32 %v231_v43, %v119_v58  ;;  %v583_v43 = vld [vmem:[%s3112_s4] sm:$0xff] }
  0xd7   :  { %v233_v61 = vpop.f32.mrf.mxu1 }
  0xd8   :  { %v320_v51 = vpop.f32.mrf.mxu0  ;;  %v234_v33 = vadd.f32 %v233_v61, %v121_v17 }
  0xd9   :  { %v321_v9 = vadd.f32 %v320_v51, %v232_v3 }
  0xda   :  { %v322_v56 = vpop.f32.mrf.mxu0 }
  0xdb   :  { %v323_v13 = vadd.f32 %v322_v56, %v234_v33  ;;  %v3218_v33 = vld [vmem:[#allocation7_spill] sm:$0xff] }
  0xdf   :  { %v402_v34 = vpop.f32.mrf.mxu1 }
  0xe0   :  { %v403_v29 = vadd.f32 %v402_v34, %v321_v9  ;;  %v3217_v9 = vld [vmem:[#allocation13_spill] sm:$0xff]  ;;  %v3219_v34 = vld [vmem:[#allocation15_spill] sm:$0xff] }
  0xe1   :  { %v404_v42 = vpop.f32.mrf.mxu1 }
  0xe2   :  { %v498_v7 = vpop.f32.mrf.mxu0  ;;  %v405_v11 = vadd.f32 %v404_v42, %v323_v13  ;;  %v3220_v13 = vld [vmem:[#allocation8_spill] sm:$0xff] }
  0xe3   :  { %v499_v24 = vadd.f32 %v498_v7, %v403_v29  ;;  %v3221_v29 = vld [vmem:[#allocation17_spill] sm:$0xff] }
  0xe4   :  { %v500_v18 = vpop.f32.mrf.mxu0 }
  0xe5   :  { %v501_v26 = vadd.f32 %v500_v18, %v405_v11  ;;  %v3222_v11 = vld [vmem:[#allocation9_spill] sm:$0xff]  ;;  %v3223_v18 = vld [vmem:[#allocation19_spill] sm:$0xff] }
  0xe8   :  { %v578_v60 = vpop.f32.mrf.mxu1 }
  0xe9   :  { %v579_v39 = vadd.f32 %v578_v60, %v499_v24  ;;  %v3224_v60 = vld [vmem:[#allocation10_spill] sm:$0xff]  ;;  %v3225_v24 = vld [vmem:[#allocation21_spill] sm:$0xff] }
  0xea   :  { %v580_v57 = vpop.f32.mrf.mxu1 }
  0xeb   :  { %v581_v27 = vadd.f32 %v580_v57, %v501_v26 }
  0xed   :  { %v586_v61 = vcombine.low %v579_v39, %v581_v27 }
  0xef   :  { %v588_v58 = vmul.f32 %v586_v61, %v583_v43  ;;  %v3226_v43 = vld [vmem:[#allocation11_spill] sm:$0xff] }
  0xf0   :  { %v3227_v61 = vld [vmem:[#allocation23_spill] sm:$0xff] }
  0xf1   :  { %v623_v17 = vcombine.high %v588_v58, %v588_v58  ;;  %v2857_v53 = vand.u32 4294901760, %v588_v58 }
  0xf3   :  { %v2859_v3 = vand.u32 4294901760, %v623_v17  ;;  %v2862_v56 = vsub.f32 %v588_v58, %v2857_v53  ;;  %v3228_v58 = vld [vmem:[#allocation12_spill] sm:$0xff] }
  0xf5   :  { %962 = vmatprep.mubr.f32.mxu1 %v2859_v3  ;;  %v722_v42 = vsub.f32 %v623_v17, %v2859_v3  ;;  %v729_v57 = vand.u32 4294901760, %v2862_v56  ;;  %v3229_v17 = vld [vmem:[#allocation25_spill] sm:$0xff] }
  0xf6   :  { %964 = vmatmul.mubr.f32.vlgmr.msra.gmra.mxu1 %v2857_v53 }
  0xf7   :  { %2078 = vmatpush3.msra.mxu1 %v2444_v59  ;;  %v723_v7 = vand.u32 4294901760, %v722_v42  ;;  %v730_v27 = vsub.f32 %v2862_v56, %v729_v57 }
  0xf8   :  { %2079 = vmatprep.subr.mxu1 %v2452_v62 }
  0xf9   :  { %2080 = vmatpush3.msra.mxu1 %v2461_v1  ;;  %1206 = vmatprep.mubr.f32.mxu1 %v723_v7  ;;  %v724_v39 = vsub.f32 %v722_v42, %v723_v7  ;;  %v731_v26 = vand.u32 4294901760, %v730_v27  ;;  %v3231_v7 = vld [vmem:[#allocation5_spill] sm:$0xff]  ;;  %v3232_v27 = vld [vmem:[#allocation16_spill] sm:$0xff] }
  0xfa   :  { %2081 = vmatprep.subr.mxu1 %v2471_v5 }
  0xfb   :  { %2082 = vmatpush3.msra.mxu1 %v2481_v10  ;;  %v725_v51 = vand.u32 4294901760, %v724_v39  ;;  %v3233_v39 = vld [vmem:[#allocation18_spill] sm:$0xff] }
  0xfc   :  { %2083 = vmatprep.subr.mxu1 %v2494_v15 }
  0xfd   :  { %2084 = vmatpush3.msra.mxu1 %v2507_v20  ;;  %726 = vmatprep.mubr.f32.mxu0 %v725_v51  ;;  %v3234_v51 = vld [vmem:[#allocation20_spill] sm:$0xff] }
  0xfe   :  { %2085 = vmatprep.subr.mxu1 %v2539_v35  ;;  %732 = vmatmul.mubr.f32.vlgmr.msra.gmra.mxu0 %v731_v26  ;;  %v3235_v26 = vld [vmem:[#allocation22_spill] sm:$0xff] }
  0xff   :  { %2043 = vmatpush3.msra.mxu0 %v2459_v0  ;;  %2086 = vmatpush3.msra.mxu1 %v2548_v40 }
 0x100   :  { %2044 = vmatprep.subr.mxu0 %v2469_v4  ;;  %1099 = vmatprep.mubr.f32.mxu0 %v722_v42  ;;  %v3230_v42 = vld [vmem:[#allocation14_spill] sm:$0xff] }
 0x101   :  { %2087 = vmatprep.subr.mxu1 %v2559_v45  ;;  %2045 = vmatpush3.msra.mxu0 %v2479_v8 }
 0x102   :  { %2088 = vmatpush3.msra.mxu1 %v2571_v50  ;;  %2046 = vmatprep.subr.mxu0 %v2492_v14 }
 0x103   :  { %2089 = vmatprep.subr.mxu1 %v2581_v55  ;;  %2047 = vmatpush3.msra.mxu0 %v2505_v19 }
 0x104   :  { %2090 = vmatpush3.msra.mxu1 %v2591_v2  ;;  %2048 = vmatprep.subr.mxu0 %v2518_v25 }
 0x105   :  { %2091 = vmatprep.subr.mxu1 %v2601_v16  ;;  %2049 = vmatpush3.msra.mxu0 %v2529_v30 }
 0x106   :  { %2092 = vmatpush3.msra.mxu1 %v2611_v23  ;;  %2050 = vmatprep.subr.mxu0 %v2557_v44 }
 0x107   :  { %2093 = vmatprep.subr.mxu1 %v2643_v48  ;;  %2051 = vmatpush3.msra.mxu0 %v2569_v49 }
 0x108   :  { %2094 = vmatpush3.msra.mxu1 %v2652_v6  ;;  %2052 = vmatprep.subr.mxu0 %v2579_v54 }
 0x109   :  { %2095 = vmatprep.subr.mxu1 %v2663_v37  ;;  %2053 = vmatpush3.msra.mxu0 %v2589_v63 }
 0x10a   :  { %2096 = vmatpush3.msra.mxu1 %v2675_v47  ;;  %2054 = vmatprep.subr.mxu0 %v2599_v12 }
 0x10b   :  { %2097 = vmatprep.subr.mxu1 %v2685_v21  ;;  %2055 = vmatpush3.msra.mxu0 %v2609_v22 }
 0x10c   :  { %2098 = vmatpush3.msra.mxu1 %v2695_v28  ;;  %2056 = vmatprep.subr.mxu0 %v2622_v32 }
 0x10d   :  { %2099 = vmatprep.subr.mxu1 %v2705_v38  ;;  %2057 = vmatpush3.msra.mxu0 %v2633_v41 }
 0x10e   :  { %2100 = vmatpush3.msra.mxu1 %v2715_v52  ;;  %2058 = vmatprep.subr.mxu0 %v2661_v36 }
 0x10f   :  { %2101 = vmatprep.subr.mxu1 %v2747_v31  ;;  %2059 = vmatpush3.msra.mxu0 %v2673_v46 }
 0x110   :  { %2102 = vmatpush3.msra.mxu1 %v3217_v9  ;;  %2060 = vmatprep.subr.mxu0 %v3218_v33 }
 0x111   :  { %2103 = vmatprep.subr.mxu1 %v3219_v34  ;;  %2061 = vmatpush3.msra.mxu0 %v3220_v13 }
 0x112   :  { %2104 = vmatpush3.msra.mxu1 %v3221_v29  ;;  %2062 = vmatprep.subr.mxu0 %v3222_v11 }
 0x113   :  { %2105 = vmatprep.subr.mxu1 %v3223_v18  ;;  %2063 = vmatpush3.msra.mxu0 %v3224_v60 }
 0x114   :  { %2106 = vmatpush3.msra.mxu1 %v3225_v24  ;;  %2064 = vmatprep.subr.mxu0 %v3226_v43 }
 0x115   :  { %2107 = vmatprep.subr.mxu1 %v3227_v61  ;;  %2065 = vmatpush3.msra.mxu0 %v3228_v58 }
 0x116   :  { %2108 = vmatpush3.msra.mxu1 %v3229_v17  ;;  %2066 = vmatprep.subr.mxu0 %v3230_v42 }
 0x117   :  { %1210 = vmatmul.mubr.f32.vlgmr.msra.gmra.mxu1 %v729_v57  ;;  %2147 = vmatprep.subr.mxu1 %v3231_v7  ;;  %v3236_v57 = vld [vmem:[#allocation24_spill] sm:$0xff]  ;;  %v3237_v7 = vld [vmem:[#allocation26_spill] sm:$0xff] }
 0x118   :  { %2067 = vmatpush3.msra.mxu0 %v3232_v27  ;;  %2148 = vmatpush3.msra.mxu1 %v2444_v59  ;;  %v3238_v59 = vld [vmem:[#allocation27_spill] sm:$0xff] }
 0x119   :  { %1480 = vmatprep.mubr.f32.mxu1 %v2859_v3  ;;  %2068 = vmatprep.subr.mxu0 %v3233_v39 }
 0x11a   :  { %2149 = vmatprep.subr.mxu1 %v2452_v62  ;;  %2069 = vmatpush3.msra.mxu0 %v3234_v51  ;;  %v3239_v62 = vld [vmem:[#allocation6_spill] sm:$0xff] }
 0x11b   :  { %2150 = vmatpush3.msra.mxu1 %v2461_v1  ;;  %2070 = vmatprep.subr.mxu0 %v3235_v26  ;;  %v3240_v1 = vand.u32 4294901760, %v3239_v62 }
 0x11c   :  { %2151 = vmatprep.subr.mxu1 %v2471_v5  ;;  %2071 = vmatpush3.msra.mxu0 %v3236_v57  ;;  %v3241_v5 = vand.u32 4294901760, %v2459_v0  ;;  %v3245_v0 = vand.u32 4294901760, %v2505_v19  ;;  %v3249_v19 = vand.u32 4294901760, %v2569_v49  ;;  %v3256_v49 = vand.u32 4294901760, %v2661_v36 }
 0x11d   :  { %2152 = vmatpush3.msra.mxu1 %v2481_v10  ;;  %2072 = vmatprep.subr.mxu0 %v3237_v7  ;;  %v3242_v10 = vand.u32 4294901760, %v2469_v4  ;;  %v3246_v4 = vand.u32 4294901760, %v2518_v25  ;;  %v3250_v25 = vand.u32 4294901760, %v2579_v54  ;;  %v3258_v54 = vand.u32 4294901760, %v3218_v33 }
 0x11e   :  { %2153 = vmatprep.subr.mxu1 %v2494_v15  ;;  %2073 = vmatpush3.msra.mxu0 %v3238_v59  ;;  %v3243_v15 = vand.u32 4294901760, %v2479_v8  ;;  %v3247_v8 = vand.u32 4294901760, %v2529_v30  ;;  %v3251_v30 = vand.u32 4294901760, %v2589_v63  ;;  %v3260_v63 = vand.u32 4294901760, %v3222_v11 }
 0x11f   :  { %2154 = vmatpush3.msra.mxu1 %v2507_v20  ;;  %1102 = vmatmul.mubr.f32.vlgmr.msra.gmra.mxu0 %v2862_v56  ;;  %v3244_v20 = vand.u32 4294901760, %v2492_v14  ;;  %v3248_v14 = vand.u32 4294901760, %v2557_v44  ;;  %v3254_v44 = vand.u32 4294901760, %v2622_v32  ;;  %v3267_v32 = vmov 0.0  }
 0x120   :  { %2112 = vmatprep.subr.mxu0 %v3240_v1  ;;  %2155 = vmatprep.subr.mxu1 %v2539_v35  ;;  %v3252_v35 = vand.u32 4294901760, %v2599_v12  ;;  %v3262_v12 = vand.u32 4294901760, %v3226_v43  ;;  %v3272_v36 = vand.u32 4294901760, %v3238_v59  ;;  %v621_v43 = vld [vmem:[%s3113_s5] sm:$0xf] }
 0x121   :  { %2113 = vmatpush3.msra.mxu0 %v3241_v5  ;;  %1376 = vmatprep.mubr.f32.mxu0 %v2859_v3 }
 0x122   :  { %2156 = vmatpush3.msra.mxu1 %v2548_v40  ;;  %2114 = vmatprep.subr.mxu0 %v3242_v10  ;;  %v3253_v40 = vand.u32 4294901760, %v2609_v22  ;;  %v3265_v22 = vand.u32 4294901760, %v3232_v27 }
 0x123   :  { %2157 = vmatprep.subr.mxu1 %v2559_v45  ;;  %2115 = vmatpush3.msra.mxu0 %v3243_v15  ;;  %v3255_v45 = vand.u32 4294901760, %v2633_v41  ;;  %v3268_v41 = vand.u32 4294901760, %v3234_v51 }
 0x124   :  { %2158 = vmatpush3.msra.mxu1 %v2571_v50  ;;  %2116 = vmatprep.subr.mxu0 %v3244_v20  ;;  %v3257_v50 = vand.u32 4294901760, %v2673_v46  ;;  %v1490_v46 = vld [vmem:[%s3111_s3] sm:$0xff] }
 0x125   :  { %2159 = vmatprep.subr.mxu1 %v2581_v55  ;;  %2117 = vmatpush3.msra.mxu0 %v3245_v0  ;;  %v3259_v55 = vand.u32 4294901760, %v3220_v13 }
 0x126   :  { %2160 = vmatpush3.msra.mxu1 %v2591_v2  ;;  %2118 = vmatprep.subr.mxu0 %v3246_v4  ;;  %v3261_v2 = vand.u32 4294901760, %v3224_v60  ;;  %v1487_v4 = vld [vmem:[%s3114_s6] sm:$0xf]  ;;  %s2272_s6 = smov [#allocation2]  }
 0x127   :  { %2161 = vmatprep.subr.mxu1 %v2601_v16  ;;  %2119 = vmatpush3.msra.mxu0 %v3247_v8  ;;  %v3263_v16 = vand.u32 4294901760, %v3228_v58  ;;  %s1964_s17 = sshll.u32 %s2272_s6, 4  ;;  %s1965_s17 = int_to_ptr.vmem [resolvable:$true] %s1964_s17 }
 0x128   :  { %2162 = vmatpush3.msra.mxu1 %v2611_v23  ;;  %2120 = vmatprep.subr.mxu0 %v3248_v14  ;;  %v3266_v23 = vand.u32 4294901760, %v3233_v39  ;;  %s2248_s19 = scalar_lea.vmem %s1965_s17, 64  ;;  %p2253_p1 = scmp.lt.s32.totalorder %s1965_s17, %s1965_s17 }
 0x129   :  { %2163 = vmatprep.subr.mxu1 %v2643_v48  ;;  %2121 = vmatpush3.msra.mxu0 %v3249_v19  ;;  %v3270_v48 = vand.u32 4294901760, %v3236_v57  ;;  %p2249_p0 = scmp.ne.s32.totalorder %s1965_s17, %s2248_s19  ;;  %p2254_p2 = scmp.lt.s32.totalorder %s2248_s19, %s2248_s19 }
 0x12a   :  { %2164 = vmatpush3.msra.mxu1 %v2652_v6  ;;  %2122 = vmatprep.subr.mxu0 %v3250_v25  ;;  %v3271_v6 = vand.u32 4294901760, %v3237_v7 }
 0x12b   :  { %2165 = vmatprep.subr.mxu1 %v2663_v37  ;;  %2123 = vmatpush3.msra.mxu0 %v3251_v30  ;;  %v1491_v37 = vld [vmem:[%s3111_s3 + $0x8] sm:$0xff]  ;;  %p2255_p3 = por %p2254_p2, %p2253_p1 }
 0x12c   :  { %2166 = vmatpush3.msra.mxu1 %v2675_v47  ;;  %2124 = vmatprep.subr.mxu0 %v3252_v35  ;;  %v3269_v47 = vand.u32 4294901760, %v3235_v26 }
 0x12d   :  { %2167 = vmatprep.subr.mxu1 %v2685_v21  ;;  %2125 = vmatpush3.msra.mxu0 %v3253_v40  ;;  %v3264_v21 = vand.u32 4294901760, %v3230_v42  ;;  %p2256_p4 = pnand %p2255_p3, %p2249_p0 }
 0x12e   :  { %2168 = vmatpush3.msra.mxu1 %v2695_v28  ;;  %2126 = vmatprep.subr.mxu0 %v3254_v44  ;;  %v3046_v28 = vand.u32 4294901760, %v1490_v46 }
 0x12f   :  { %2169 = vmatprep.subr.mxu1 %v2705_v38  ;;  %2127 = vmatpush3.msra.mxu0 %v3255_v45 }
 0x130   :  { %2170 = vmatpush3.msra.mxu1 %v2715_v52  ;;  %2128 = vmatprep.subr.mxu0 %v3256_v49  ;;  %v3044_v52 = vand.u32 4294901760, %v1491_v37 }
 0x131   :  { %2171 = vmatprep.subr.mxu1 %v2747_v31  ;;  %2129 = vmatpush3.msra.mxu0 %v3257_v50  ;;  %v3056_v31 = vsub.f32 %v1490_v46, %v3046_v28 }
 0x132   :  { %2172 = vmatpush3.msra.mxu1 %v3217_v9  ;;  %2130 = vmatprep.subr.mxu0 %v3258_v54  ;;  %v3053_v38 = vsub.f32 %v1491_v37, %v3044_v52 }
 0x133   :  { %2173 = vmatprep.subr.mxu1 %v3219_v34  ;;  %2131 = vmatpush3.msra.mxu0 %v3259_v55  ;;  %v1611_v3 = vand.u32 4294901760, %v3056_v31 }
 0x134   :  { %2174 = vmatpush3.msra.mxu1 %v3221_v29  ;;  %2132 = vmatprep.subr.mxu0 %v3260_v63 }
 0x135   :  { %2175 = vmatprep.subr.mxu1 %v3223_v18  ;;  %2133 = vmatpush3.msra.mxu0 %v3261_v2  ;;  %v1612_v9 = vsub.f32 %v3056_v31, %v1611_v3 }
 0x136   :  { %2176 = vmatpush3.msra.mxu1 %v3225_v24  ;;  %2134 = vmatprep.subr.mxu0 %v3262_v12 }
 0x137   :  { %2177 = vmatprep.subr.mxu1 %v3227_v61  ;;  %2135 = vmatpush3.msra.mxu0 %v3263_v16  ;;  %v1613_v34 = vand.u32 4294901760, %v1612_v9 }
 0x138   :  { %2178 = vmatpush3.msra.mxu1 %v3229_v17  ;;  %2136 = vmatprep.subr.mxu0 %v3264_v21 }
 0x139   :  { %1482 = vmatmul.mubr.f32.vlgmr.msra.gmra.mxu1 %v2857_v53  ;;  %2137 = vmatpush3.msra.mxu0 %v3265_v22 }
 0x13a   :  { %2138 = vmatprep.subr.mxu0 %v3266_v23  ;;  %2207 = vmatprep.subr.mxu1 %v3267_v32 }
 0x13b   :  { %2139 = vmatpush3.msra.mxu0 %v3268_v41  ;;  %2211 = vmatprep.mubr.msk.f32.mxu1 %vm2271_vm1, %v3267_v32 }
 0x13c   :  { %2140 = vmatprep.subr.mxu0 %v3269_v47 }
 0x13d   :  { %2141 = vmatpush3.msra.mxu0 %v3270_v48 }
 0x13e   :  { %2142 = vmatprep.subr.mxu0 %v3271_v6 }
 0x13f   :  { %2143 = vmatpush3.msra.mxu0 %v3272_v36  ;;  %v2247_v36 = vld [vmem:[%s3108_s0] sm:$0xf] }
 0x140   :  { %1378 = vmatmul.mubr.f32.vlgmr.msra.gmra.mxu0 %v2857_v53  ;;  %2200 = vmatprep.subr.mxu0 %v3267_v32  ;;  %v1604_v53 = vand.u32 4294901760, %v3053_v38 }
 0x141   :  { %2204 = vmatprep.mubr.msk.f32.mxu0 %vm2271_vm1, %v3267_v32  ;;  %2201 = vmatpush3.msra.mxu0 %v3044_v52 }
 0x142   :  { %2202 = vmatprep.subr.mxu0 %v3267_v32  ;;  %v1605_v56 = vsub.f32 %v3053_v38, %v1604_v53 }
 0x143   :  { %2203 = vmatpush3.msra.mxu0 %v3046_v28 }
 0x144   :  { %2214 = vmatprep.subr.mxu0 %v3267_v32  ;;  %v1606_v33 = vand.u32 4294901760, %v1605_v56 }
 0x146   :  { %2208 = vmatpush3.msra.mxu1 %v1606_v33 }
 0x147   :  { %2209 = vmatprep.subr.mxu1 %v3267_v32 }
 0x148   :  { %2210 = vmatpush3.msra.mxu1 %v1613_v34 }
 0x149   :  { %2221 = vmatprep.subr.mxu1 %v3267_v32 }
 0x1b6   :  { %v2039_v29 = vpop.f32.mrf.mxu1 }
 0x1b8   :  { %v2040_v24 = vpop.f32.mrf.mxu1 }
 0x1b9   :  { %v2041_v42 = vadd.f32 %v2040_v24, %v2039_v29 }
 0x1be   :  { %v2004_v13 = vpop.f32.mrf.mxu0 }
 0x1c0   :  { %v2005_v11 = vpop.f32.mrf.mxu0 }
 0x1c1   :  { %v2006_v60 = vadd.f32 %v2005_v11, %v2004_v13 }
 0x1c3   :  { %v734_v17 = vadd.f32 %v2006_v60, %v621_v43 }
 0x1c5   :  { %v966_v51 = vadd.f32 %v2041_v42, %v734_v17 }
 0x1d7   :  { %v2109_v61 = vpop.f32.mrf.mxu1 }
 0x1d9   :  { %v2110_v39 = vpop.f32.mrf.mxu1 }
 0x1da   :  { %v2111_v59 = vadd.f32 %v2110_v39, %v2109_v61 }
 0x1df   :  { %v2074_v18 = vpop.f32.mrf.mxu0 }
 0x1e1   :  { %v2075_v58 = vpop.f32.mrf.mxu0 }
 0x1e2   :  { %v2076_v27 = vadd.f32 %v2075_v58, %v2074_v18 }
 0x1e4   :  { %v1104_v57 = vadd.f32 %v2076_v27, %v966_v51 }
 0x1e6   :  { %v1212_v5 = vadd.f32 %v2111_v59, %v1104_v57 }
 0x1f9   :  { %v2179_v26 = vpop.f32.mrf.mxu1 }
 0x1fb   :  { %v2180_v62 = vpop.f32.mrf.mxu1 }
 0x1fc   :  { %v2181_v15 = vadd.f32 %v2180_v62, %v2179_v26 }
 0x200   :  { %v2144_v7 = vpop.f32.mrf.mxu0 }
 0x202   :  { %v2145_v1 = vpop.f32.mrf.mxu0 }
 0x203   :  { %v2146_v10 = vadd.f32 %v2145_v1, %v2144_v7 }
 0x205   :  { %v1380_v20 = vadd.f32 %v2146_v10, %v1212_v5 }
 0x207   :  { %v1484_v0 = vadd.f32 %v2181_v15, %v1380_v20 }
 0x209   :  { %2245 = vtanh.f32 %v1484_v0 }
 0x216   :  { %v2246_v8 = vpop.eup %2245 }
 0x217   :  { %v1489_v14 = vmul.f32 %v2246_v8, %v1487_v4 }
 0x219   :  { %v1494_v19 = vsel %vm1492_vm2, %v1489_v14, 0 }
 0x21a   :  { %v1563_v25 = vand.u32 4294901760, %v1494_v19 }
 0x21c   :  { %v1564_v30 = vsub.f32 %v1494_v19, %v1563_v25  ;;  %2212 = vmatmul.mubr.f32.vlgmr.msra.gmra.mxu1 %v1563_v25 }
 0x21d   :  { %2222 = vmatpush3.msra.mxu1 %v3044_v52  ;;  %2225 = vmatprep.mubr.msk.f32.mxu1 %vm2271_vm1, %v3267_v32 }
 0x21e   :  { %2223 = vmatprep.subr.mxu1 %v3267_v32  ;;  %v1565_v35 = vand.u32 4294901760, %v1564_v30 }
 0x21f   :  { %2224 = vmatpush3.msra.mxu1 %v3046_v28 }
 0x220   :  { %2226 = vmatmul.mubr.f32.vlgmr.msra.gmra.mxu1 %v1565_v35  ;;  %2235 = vmatprep.subr.mxu1 %v3267_v32  ;;  %v1566_v40 = vsub.f32 %v1564_v30, %v1565_v35 }
 0x221   :  { %2236 = vmatpush3.msra.mxu1 %v3044_v52  ;;  %2239 = vmatprep.mubr.msk.f32.mxu1 %vm2271_vm1, %v3267_v32 }
 0x222   :  { %2237 = vmatprep.subr.mxu1 %v3267_v32  ;;  %v1567_v44 = vand.u32 4294901760, %v1566_v40 }
 0x223   :  { %2238 = vmatpush3.msra.mxu1 %v3046_v28 }
 0x224   :  { %2205 = vmatmul.mubr.f32.vlgmr.msra.gmra.mxu0 %v1567_v44  ;;  %2240 = vmatmul.mubr.f32.vlgmr.msra.gmra.mxu1 %v1563_v25 }
 0x225   :  { %2215 = vmatpush3.msra.mxu0 %v3053_v38  ;;  %2218 = vmatprep.mubr.msk.f32.mxu0 %vm2271_vm1, %v3267_v32 }
 0x226   :  { %2216 = vmatprep.subr.mxu0 %v3267_v32 }
 0x227   :  { %2217 = vmatpush3.msra.mxu0 %v3056_v31 }
 0x228   :  { %2228 = vmatprep.subr.mxu0 %v3267_v32  ;;  %2219 = vmatmul.mubr.f32.vlgmr.msra.gmra.mxu0 %v1564_v30 }
 0x229   :  { %2229 = vmatpush3.msra.mxu0 %v1604_v53  ;;  %2232 = vmatprep.mubr.msk.f32.mxu0 %vm2271_vm1, %v3267_v32 }
 0x22a   :  { %2230 = vmatprep.subr.mxu0 %v3267_v32 }
 0x22b   :  { %2231 = vmatpush3.msra.mxu0 %v1611_v3 }
 0x22c   :  { %2233 = vmatmul.mubr.f32.vlgmr.msra.gmra.mxu0 %v1563_v25 }
 0x2dc   :  { %v1650_v45 = vpop.f32.mrf.mxu1 }
 0x2de   :  { %v2213_v49 = vpop.f32.mrf.mxu1 }
 0x2e0   :  { %v1801_v50 = vpop.f32.mrf.mxu1 }
 0x2e2   :  { %v2227_v54 = vpop.f32.mrf.mxu1 }
 0x2e4   :  { %v1569_v55 = vpop.f32.mrf.mxu0  ;;  %v1951_v63 = vpop.f32.mrf.mxu1 }
 0x2e5   :  { %v1651_v16 = vadd.f32 %v1650_v45, %v1569_v55 }
 0x2e6   :  { %v2206_v2 = vpop.f32.mrf.mxu0  ;;  %v2241_v12 = vpop.f32.mrf.mxu1 }
 0x2e8   :  { %v1726_v21 = vpop.f32.mrf.mxu0 }
 0x2e9   :  { %v1727_v22 = vadd.f32 %v1726_v21, %v1651_v16 }
 0x2ea   :  { %v2220_v23 = vpop.f32.mrf.mxu0 }
 0x2eb   :  { %v1802_v41 = vadd.f32 %v1801_v50, %v1727_v22 }
 0x2ec   :  { %v1878_v47 = vpop.f32.mrf.mxu0 }
 0x2ed   :  { %v1879_v48 = vadd.f32 %v1878_v47, %v1802_v41 }
 0x2ee   :  { %v2234_v32 = vpop.f32.mrf.mxu0 }
 0x2ef   :  { %v1952_v6 = vadd.f32 %v1951_v63, %v1879_v48 }
 0x2f1   :  { %v1955_v37 = vadd.f32 %v2247_v36, %v1952_v6 }
 0x2f3   :  { %1957 = vst.msk [vmem:[#allocation2] sm:$0xf] %vm1956_vm3, %v1955_v37 }
 0x2f4   :  { %2259 = shalt.err (!%p2256_p4)
}
 0x2f5   :  { %1967 = dma.vmem_to_hbm [thread:$0]  %s1965_s17, 64, %s3115_s7, [#allocation3]  }
 0x2f6   :  { %2268 = dma.done.wait [#allocation3], 64  }
 0x2f7   :  { %2269 = vsyncadd [#allocation3], 4294967232 }
 0x2f8   :  { %1971 = vsyncpa [#allocation3], 1 }

</bundles_post_ra>
